<compile_context>
chip_gen: v6e
topology: v6e:2x2x1
jax: 0.10.0
libtpu: 0.0.40
codegen_flags: <defaults>
</compile_context>

<pallas_src>
import functools

import jax
import jax.numpy as jnp
import numpy as np
from jax import lax
from jax.experimental import pallas as pl
from jax.experimental.pallas import tpu as pltpu

_EPS = 1e-6
_LANE = 128
_SUBLANE = 8


def _round_up(a: int, b: int) -> int:
    return (a + b - 1) // b * b


def _cdiv(a: int, b: int) -> int:
    return -(-a // b)


def _vmem_and_tile_budget() -> tuple[int, int]:
    """Generation-aware (vmem_limit_bytes, x-tile byte target)."""
    try:
        phys = int(pltpu.get_tpu_info().vmem_capacity_bytes)
    except Exception:  # conservative default if the query is unavailable
        phys = 64 * 1024 * 1024
    if phys >= 96 * 1024 * 1024:
        # v5e / v6e class: 128 MiB physical VMEM, slower HBM -> big tiles.
        return 64 * 1024 * 1024, 12 * 1024 * 1024
    # v7x class: 64 MiB VMEM per TensorCore -> stay within budget
    # (Phase 2 holds ~4x the x tile with double buffering).
    return 44 * 1024 * 1024, 5 * 1024 * 1024


# -------------------------- Fused single-pass path -------------------------- #
def _fused_kernel(x_ref, o_ref, *, mode: str, scale: float, n_rows: int):
    x = x_ref[...].astype(jnp.float32)
    inv_n = 1.0 / float(n_rows)
    mu = jnp.sum(x, axis=0, keepdims=True) * inv_n                 # (1, D)
    if mode == "PN":
        xc = x - mu
        msq = jnp.sum(xc * xc, axis=(0, 1), keepdims=True) * inv_n  # (1, 1)
        out = xc * (scale * lax.rsqrt(_EPS + msq))
    elif mode == "PN-SI":
        xc = x - mu
        rinv = scale * lax.rsqrt(_EPS + jnp.sum(xc * xc, axis=1, keepdims=True))
        out = xc * rinv
    else:  # PN-SCS
        rinv = scale * lax.rsqrt(_EPS + jnp.sum(x * x, axis=1, keepdims=True))
        out = x * rinv - mu
    o_ref[...] = out.astype(o_ref.dtype)


# ------------------------ Phase 1: streaming statistics --------------------- #
def _stats_kernel(x_ref, *out_refs, mode: str, n_rows: int, tn: int,
                  tiles_per_split: int, needs_mask: bool):
    if mode == "PN":
        colsum_ref, sumsq_ref = out_refs
    else:
        (colsum_ref,) = out_refs
        sumsq_ref = None

    c = pl.program_id(0)          # split index  ("parallel" -> v7x megacore)
    t = pl.program_id(1)          # tile within split ("arbitrary" reduction)

    @pl.when(t == 0)
    def _init():
        colsum_ref[...] = jnp.zeros_like(colsum_ref)
        if mode == "PN":
            sumsq_ref[...] = jnp.zeros_like(sumsq_ref)

    x = x_ref[...].astype(jnp.float32)
    if needs_mask:
        # Ragged tail / surplus tiles: zero out-of-range rows BEFORE squaring.
        start = (c * tiles_per_split + t) * tn
        rows_left = n_rows - start                      # may be <= 0
        rid = lax.broadcasted_iota(jnp.int32, (tn, 1), 0)
        x = jnp.where(rid < rows_left, x, 0.0)

    # Lane-dense partial sums.  The (1, d) result broadcasts over the 8-row
    # resident block -> full unmasked vreg stores; the wrapper reads row 0.
    colsum_ref[...] += jnp.sum(x, axis=0, keepdims=True)
    if mode == "PN":
        sumsq_ref[...] += jnp.sum(x * x, axis=0, keepdims=True)


# ------------------------- Phase 2: scale / normalize ----------------------- #
def _scale_kernel(x_ref, stats_ref, o_ref, *, mode: str, scale: float):
    x = x_ref[...].astype(jnp.float32)
    mu = stats_ref[0:1, :]                                          # (1, d)
    if mode == "PN":
        out = (x - mu) * stats_ref[1:2, :]       # row 1 = scale*rsqrt(...)
    elif mode == "PN-SI":
        xc = x - mu
        rinv = scale * lax.rsqrt(_EPS + jnp.sum(xc * xc, axis=1, keepdims=True))
        out = xc * rinv
    else:  # PN-SCS
        rinv = scale * lax.rsqrt(_EPS + jnp.sum(x * x, axis=1, keepdims=True))
        out = x * rinv - mu
    o_ref[...] = out.astype(o_ref.dtype)


# ---------------------------------- Wrapper --------------------------------- #
def pairnorm(x: jax.Array, mode: str = "PN", scale: float = 1.0,
             *, block_rows: int | None = None) -> jax.Array:
    """PairNorm forward. x: [N, D] node features.

    block_rows=None -> automatic tiling (small inputs take the fused path);
    block_rows=<int> forces the two-phase streaming path with that row tile.
    """
    assert mode in ["None", "PN", "PN-SI", "PN-SCS"]
    if mode == "None":
        return x

    N, D = x.shape
    scale = float(scale)
    itemsize = jnp.dtype(x.dtype).itemsize
    vmem_limit, tile_bytes = _vmem_and_tile_budget()
    d_pad = _round_up(D, _LANE)

    # ----- Fused single-pass path (skips the second HBM read of x) -----
    # ~20 bytes/element working-set estimate (in + out + f32 temporaries).
    fused_footprint = _round_up(N, _SUBLANE) * d_pad * (2 * itemsize + 12)
    if block_rows is None and fused_footprint <= vmem_limit // 2:
        kern = functools.partial(_fused_kernel, mode=mode, scale=scale, n_rows=N)
        return pl.pallas_call(
            kern,
            out_shape=jax.ShapeDtypeStruct((N, D), x.dtype),
            compiler_params=pltpu.CompilerParams(vmem_limit_bytes=vmem_limit),
            cost_estimate=pl.CostEstimate(
                flops=6 * N * D, transcendentals=N,
                bytes_accessed=2 * N * D * itemsize),
        )(x)

    # ----- Two-phase streaming path -----
    # Lane pad only when D % 128 != 0 (zero columns are neutral statistics).
    xp = jnp.pad(x, ((0, 0), (0, d_pad - D))) if d_pad != D else x

    sub = 8 if itemsize >= 4 else (16 if itemsize == 2 else 32)
    if block_rows is not None:
        tn = max(sub, _round_up(int(block_rows), sub))
    else:
        tn = max(sub, (tile_bytes // (d_pad * itemsize)) // sub * sub)
    tn = min(tn, _round_up(N, sub))
    num_tiles = _cdiv(N, tn)
    n_split = 2 if num_tiles >= 2 else 1        # shards Phase 1 on 2-TC chips
    tps = _cdiv(num_tiles, n_split)
    needs_mask = (n_split * tps * tn) != N

    # Phase 1: per-split lane-dense partial statistics.
    stats_kern = functools.partial(_stats_kernel, mode=mode, n_rows=N, tn=tn,
                                   tiles_per_split=tps, needs_mask=needs_mask)
    part_shape = jax.ShapeDtypeStruct((n_split * 8, d_pad), jnp.float32)
    part_spec = pl.BlockSpec((8, d_pad), lambda c, t: (c, 0))
    n_out = 2 if mode == "PN" else 1
    x_spec = pl.BlockSpec(
        (tn, d_pad),
        lambda c, t: (jnp.minimum(c * tps + t, num_tiles - 1), 0))  # clamp OOB tiles

    parts = pl.pallas_call(
        stats_kern,
        out_shape=tuple([part_shape] * n_out),
        grid=(n_split, tps),
        in_specs=[x_spec],
        out_specs=tuple([part_spec] * n_out),
        compiler_params=pltpu.CompilerParams(
            dimension_semantics=("parallel", "arbitrary"),
            vmem_limit_bytes=vmem_limit),
        cost_estimate=pl.CostEstimate(
            flops=3 * N * d_pad, transcendentals=0,
            bytes_accessed=N * d_pad * itemsize),
    )(xp)

    # Tiny combine + finalize on (n_split*8, d_pad) partials (a few KiB).
    if mode == "PN":
        colsum_p, sumsq_p = parts
    else:
        (colsum_p,) = parts
    colsum = colsum_p[0::8, :].sum(axis=0)                  # (d_pad,)
    mu = (colsum / float(N)).astype(jnp.float32)
    stats = jnp.zeros((8, d_pad), jnp.float32).at[0].set(mu)
    if mode == "PN":
        total_sq = sumsq_p[0::8, :].sum()
        centered = jnp.maximum(total_sq - float(N) * jnp.sum(mu * mu), 0.0)
        coef = scale * lax.rsqrt(_EPS + centered / float(N))
        stats = stats.at[1].set(coef)

    # Phase 2: elementwise output pass; ragged tail writes are simply dropped.
    scale_kern = functools.partial(_scale_kernel, mode=mode, scale=scale)
    yp = pl.pallas_call(
        scale_kern,
        out_shape=jax.ShapeDtypeStruct((N, d_pad), x.dtype),
        grid=(num_tiles,),
        in_specs=[pl.BlockSpec((tn, d_pad), lambda t: (t, 0)),
                  pl.BlockSpec((8, d_pad), lambda t: (0, 0))],
        out_specs=pl.BlockSpec((tn, d_pad), lambda t: (t, 0)),
        compiler_params=pltpu.CompilerParams(
            dimension_semantics=("parallel",),
            vmem_limit_bytes=vmem_limit),
        cost_estimate=pl.CostEstimate(
            flops=4 * N * d_pad,
            transcendentals=N if mode in ("PN-SI", "PN-SCS") else 0,
            bytes_accessed=2 * N * d_pad * itemsize),
    )(xp, stats)

    return yp[:, :D] if d_pad != D else yp


# -------------------------------- Pure-JAX ref ------------------------------- #
def _pairnorm_ref(x, mode="PN", scale=1.0):
    """Pure-JAX reference mirroring the PyTorch module exactly."""
    if mode == "None":
        return x
    x = x.astype(jnp.float32)
    col_mean = x.mean(axis=0)
    if mode == "PN":
        xc = x - col_mean
        rownorm_mean = jnp.sqrt(1e-6 + (xc ** 2).sum(axis=1).mean())
        return scale * xc / rownorm_mean
    if mode == "PN-SI":
        xc = x - col_mean
        rn = jnp.sqrt(1e-6 + (xc ** 2).sum(axis=1, keepdims=True))
        return scale * xc / rn
    if mode == "PN-SCS":
        rn = jnp.sqrt(1e-6 + (x ** 2).sum(axis=1, keepdims=True))
        return scale * x / rn - col_mean


if __name__ == "__main__":
    key = jax.random.PRNGKey(0)
    ok = True
    cases = [
        # (shape, block_rows)
        ((32, 64), None),     # fused single-pass path (D < 128, no padding)
        ((100, 256), 16),     # two-phase: ragged rows, lane-aligned, 2-way split
        ((100, 96), 24),      # two-phase: ragged rows + lane padding
    ]
    for (shape, br) in cases:
        key, sub = jax.random.split(key)
        x = jax.random.normal(sub, shape, dtype=jnp.float32) + 0.25
        for mode in ["PN", "PN-SI", "PN-SCS", "None"]:
            out = jax.block_until_ready(
                pairnorm(x, mode=mode, scale=1.0, block_rows=br))
            ref = jax.block_until_ready(_pairnorm_ref(x, mode=mode, scale=1.0))
            if not np.allclose(np.asarray(out), np.asarray(ref),
                               rtol=1e-4, atol=1e-5):
                ok = False
                print(f"MISMATCH mode={mode} shape={shape} block_rows={br}")

    if ok:
        print("KERNEL_OK")
</pallas_src>

<mosaic_0001>
module attributes {stable_mosaic.version = 11 : i64} {
  func.func @_fused_kernel(%arg0: memref<32x64xf32, #tpu.memory_space<vmem>>, %arg1: memref<32x64xf32, #tpu.memory_space<vmem>>) attributes {dimension_semantics = [], scalar_prefetch = 0 : i64, scratch_operands = 0 : i64, tpu.core_type = #tpu.core_type<tc>} {
    %c0 = arith.constant 0 : index
    %c0_0 = arith.constant 0 : index
    %0 = vector.load %arg0[%c0, %c0_0] : memref<32x64xf32, #tpu.memory_space<vmem>>, vector<32x64xf32>
    %cst = arith.constant dense<0.000000e+00> : vector<64xf32>
    %1 = vector.multi_reduction <add>, %0, %cst [0] : vector<32x64xf32> to vector<64xf32>
    %2 = vector.shape_cast %1 : vector<64xf32> to vector<1x64xf32>
    %cst_1 = arith.constant 3.125000e-02 : f32
    %3 = vector.broadcast %cst_1 : f32 to vector<1x64xf32>
    %4 = arith.mulf %2, %3 : vector<1x64xf32>
    %5 = vector.broadcast %4 : vector<1x64xf32> to vector<32x64xf32>
    %6 = arith.subf %0, %5 : vector<32x64xf32>
    %7 = arith.mulf %6, %6 : vector<32x64xf32>
    %8 = vector.shape_cast %7 : vector<32x64xf32> to vector<1x32x64xf32>
    %cst_2 = arith.constant dense<0.000000e+00> : vector<1xf32>
    %9 = vector.multi_reduction <add>, %8, %cst_2 [1, 2] : vector<1x32x64xf32> to vector<1xf32>
    %10 = vector.shape_cast %9 : vector<1xf32> to vector<1x1x1xf32>
    %11 = vector.extract %10[0, 0, 0] : f32 from vector<1x1x1xf32>
    %12 = vector.broadcast %11 : f32 to vector<1x1xf32>
    %cst_3 = arith.constant 3.125000e-02 : f32
    %13 = vector.broadcast %cst_3 : f32 to vector<1x1xf32>
    %14 = arith.mulf %12, %13 : vector<1x1xf32>
    %cst_4 = arith.constant 9.99999997E-7 : f32
    %15 = vector.broadcast %cst_4 : f32 to vector<1x1xf32>
    %16 = arith.addf %15, %14 : vector<1x1xf32>
    %17 = math.rsqrt %16 : vector<1x1xf32>
    %cst_5 = arith.constant 1.000000e+00 : f32
    %18 = vector.broadcast %cst_5 : f32 to vector<1x1xf32>
    %19 = arith.mulf %18, %17 : vector<1x1xf32>
    %20 = vector.broadcast %19 : vector<1x1xf32> to vector<32x64xf32>
    %21 = arith.mulf %6, %20 : vector<32x64xf32>
    %c0_6 = arith.constant 0 : index
    %c0_7 = arith.constant 0 : index
    %22 = vector.load %arg1[%c0_6, %c0_7] : memref<32x64xf32, #tpu.memory_space<vmem>>, vector<32x64xf32>
    tpu.vector_store %arg1[%c0_6, %c0_7], %21 {strides = array<i32>} : memref<32x64xf32, #tpu.memory_space<vmem>>, vector<32x64xf32>,
    return
  }
}

</mosaic_0001>

<bundles_post_ra>
// kernel: tpu_custom_call.1
= control target key start
LH: loop header
LB: loop body
LE: loop exit
PB: predicated region body
PF: predicated region fallthrough
CT: control target
= control target key end

     0   :  { %6 = vsyncpa [#allocation3], 0  ;;  %s185_s0 = inlined_call_operand.hbm [shape: f32[32,64], index: 0, kind: input, shape index: {}]   ;;  %s186_s1 = inlined_call_operand.hbm [shape: f32[32,64], index: 1, kind: output, shape index: {}]  }
   0x1   :  { %7 = vsyncpa [#allocation4], 0  ;;  %s147_s6 = smov [#allocation2]  }
   0x2   :  { %s13_s7 = sshll.u32 %s147_s6, 4  ;;  %s14_s7 = int_to_ptr.vmem [resolvable:$true] %s13_s7 }
   0x3   :  { %s111_s8 = scalar_lea.vmem %s14_s7, 512  ;;  %p116_p1 = scmp.lt.s32.totalorder %s14_s7, %s14_s7 }
   0x4   :  { %p112_p0 = scmp.ne.s32.totalorder %s14_s7, %s111_s8  ;;  %p117_p2 = scmp.lt.s32.totalorder %s111_s8, %s111_s8 }
   0x6   :  { %p118_p3 = por %p117_p2, %p116_p1 }
   0x8   :  { %p119_p4 = pnand %p118_p3, %p112_p0 }
   0xa   :  { %122 = shalt.err (!%p119_p4)
}
   0xb   :  { %s148_s9 = smov 128   ;;  %s149_s10 = smov 8  }
   0xc   :  { %19 = dma.hbm_to_vmem [thread:$0]  %s185_s0, 512, %s14_s7, [#allocation3], %s148_s9, %s148_s9, %s149_s10  }
   0xd   :  { %143 = dma.done.wait [#allocation3], 512  }
   0xe   :  { %144 = vsyncadd [#allocation3], 4294966784  ;;  %vm27_vm0 = vcmask 523264   ;;  %v23_v0 = vld [vmem:[#allocation2] sm:$0xff]  ;;  %v24_v1 = vld [vmem:[#allocation2 + $0x8] sm:$0xff]  ;;  %s150_s13 = smov [#allocation5]  }
   0xf   :  { %v25_v2 = vld [vmem:[#allocation2 + $0x10] sm:$0xff]  ;;  %v26_v3 = vld [vmem:[#allocation2 + $0x18] sm:$0xff]  ;;  %v28_v4 = vsel %vm27_vm0, %v23_v0, 0.0  ;;  %v29_v5 = vsel %vm27_vm0, %v24_v1, 0.0  ;;  %s83_s14 = sshll.u32 %s150_s13, 4  ;;  %s84_s14 = int_to_ptr.vmem [resolvable:$true] %s83_s14 }
  0x10   :  { %v31_v6 = vsel %vm27_vm0, %v25_v2, 0.0  ;;  %v30_v7 = vadd.f32 %v29_v5, %v28_v4  ;;  %v33_v8 = vsel %vm27_vm0, %v26_v3, 0.0  ;;  %s123_s15 = scalar_lea.vmem %s84_s14, 512  ;;  %p128_p6 = scmp.lt.s32.totalorder %s84_s14, %s84_s14 }
  0x11   :  { %p124_p5 = scmp.ne.s32.totalorder %s84_s14, %s123_s15  ;;  %p129_p7 = scmp.lt.s32.totalorder %s123_s15, %s123_s15 }
  0x12   :  { %v32_v9 = vadd.f32 %v31_v6, %v30_v7 }
  0x13   :  { %p130_p8 = por %p129_p7, %p128_p6 }
  0x14   :  { %v34_v10 = vadd.f32 %v33_v8, %v32_v9 }
  0x15   :  { %p131_p9 = pnand %p130_p8, %p124_p5 }
  0x16   :  { %v35_v11 = vrot.slane %v34_v10, 4 }
  0x18   :  { %v36_v12 = vadd.f32 %v35_v11, %v34_v10 }
  0x1a   :  { %v37_v13 = vrot.slane %v36_v12, 2 }
  0x1c   :  { %v38_v14 = vadd.f32 %v37_v13, %v36_v12 }
  0x1e   :  { %v39_v15 = vrot.slane %v38_v14, 1 }
  0x20   :  { %v40_v16 = vadd.f32 %v39_v15, %v38_v14 }
  0x22   :  { %v41_v17 = vmul.f32 0.03125, %v40_v16 }
  0x24   :  { %v42_v18 = vsub.f32 %v23_v0, %v41_v17  ;;  %v43_v19 = vsub.f32 %v24_v1, %v41_v17  ;;  %v44_v20 = vsub.f32 %v25_v2, %v41_v17  ;;  %v45_v21 = vsub.f32 %v26_v3, %v41_v17 }
  0x26   :  { %v46_v22 = vmul.f32 %v42_v18, %v42_v18  ;;  %v47_v23 = vmul.f32 %v43_v19, %v43_v19  ;;  %v48_v24 = vmul.f32 %v44_v20, %v44_v20  ;;  %v49_v25 = vmul.f32 %v45_v21, %v45_v21 }
  0x28   :  { %v50_v26 = vsel %vm27_vm0, %v46_v22, 0.0  ;;  %v51_v27 = vsel %vm27_vm0, %v47_v23, 0.0  ;;  %v53_v28 = vsel %vm27_vm0, %v48_v24, 0.0  ;;  %v55_v30 = vsel %vm27_vm0, %v49_v25, 0.0 }
  0x29   :  { %v52_v29 = vadd.f32 %v51_v27, %v50_v26 }
  0x2b   :  { %v54_v31 = vadd.f32 %v53_v28, %v52_v29 }
  0x2d   :  { %v56_v32 = vadd.f32 %v55_v30, %v54_v31 }
  0x2f   :  { %57 = vadd.xlane.f32.xlu0 %v56_v32 }
  0xb8   :  { %v58_v33 = vpop.xlane.xlu0 %57 }
  0xb9   :  { %v59_v34 = vrot.slane %v58_v33, 4 }
  0xbb   :  { %v60_v35 = vadd.f32 %v59_v34, %v58_v33 }
  0xbd   :  { %v61_v36 = vrot.slane %v60_v35, 2 }
  0xbf   :  { %v62_v37 = vadd.f32 %v61_v36, %v60_v35 }
  0xc1   :  { %v63_v38 = vrot.slane %v62_v37, 1 }
  0xc3   :  { %v64_v39 = vadd.f32 %v63_v38, %v62_v37 }
  0xc5   :  { %95 = vpush %v64_v39 }
  0xf6   :  { %s96_s0 = spop %95 }
  0xf7   :  { %v66_v40 = vstv %s96_s0 }
  0xf8   :  { %v67_v41 = vmul.f32 0.03125, %v66_v40 }
  0xfa   :  { %v68_v42 = vadd.f32 1e-06, %v67_v41 }
  0xfc   :  { %101 = vrsqrt.f32 %v68_v42 }
 0x109   :  { %v102_v43 = vpop.eup %101 }
 0x10a   :  { %v70_v44 = vmul.f32 %v102_v43, %v42_v18  ;;  %v71_v45 = vmul.f32 %v102_v43, %v43_v19  ;;  %v72_v46 = vmul.f32 %v102_v43, %v44_v20  ;;  %v73_v47 = vmul.f32 %v102_v43, %v45_v21 }
 0x10c   :  { %74 = vst.msk [vmem:[#allocation5] sm:$0xff] %vm27_vm0, %v70_v44  ;;  %75 = vst.msk [vmem:[#allocation5 + $0x8] sm:$0xff] %vm27_vm0, %v71_v45 }
 0x10d   :  { %76 = vst.msk [vmem:[#allocation5 + $0x10] sm:$0xff] %vm27_vm0, %v72_v46  ;;  %77 = vst.msk [vmem:[#allocation5 + $0x18] sm:$0xff] %vm27_vm0, %v73_v47 }
 0x10e   :  { %134 = shalt.err (!%p131_p9)
}
 0x10f   :  { %89 = dma.vmem_to_hbm [thread:$0]  %s84_s14, 512, %s186_s1, [#allocation4], %s148_s9, %s148_s9, %s149_s10  }
 0x110   :  { %145 = dma.done.wait [#allocation4], 512  }
 0x111   :  { %146 = vsyncadd [#allocation4], 4294966784 }
 0x112   :  { %93 = vsyncpa [#allocation3], 1 }
 0x113   :  { %94 = vsyncpa [#allocation4], 1 }

</bundles_post_ra>
